<compile_context>
chip_gen: v5e
topology: v5e:2x2
jax: 0.10.0
libtpu: 0.0.40
codegen_flags: <defaults>
</compile_context>

<pallas_src>
import functools

import jax
import jax.numpy as jnp
from jax.experimental import pallas as pl
from jax.experimental.pallas import tpu as pltpu


def _round_up(x, m):
    return (x + m - 1) // m * m


def _chip_defaults():
    """(nsplit, tb_max) per chip generation.

    v7x: 2 TensorCores -> parallel split of 2, bigger tiles (fast HBM makes the
    per-step overhead relatively larger), but only 64 MiB VMEM.
    v5e/v6e (and anything else): 1 TensorCore -> no split, 4096-wide tiles.
    """
    kind = ""
    try:
        kind = jax.devices()[0].device_kind.lower()
    except Exception:
        pass
    is_v7 = "v7" in kind
    nsplit = 2 if is_v7 else 1
    tb_max = 8192 if is_v7 else 4096
    return nsplit, tb_max


def _bce_with_logits(logits, target):
    # Matches F.binary_cross_entropy_with_logits (reduction done by caller):
    #   max(x, 0) - x*z + log(1 + exp(-|x|))
    return (jnp.maximum(logits, 0.0) - logits * target
            + jnp.log1p(jnp.exp(-jnp.abs(logits))))


def _macr_rate_kernel(ue_ref, nue_ref, pi_ref, ni_ref, rate_ref,
                      user_w_ref, item_w_ref, user_b_ref, item_b_ref,
                      out_ref, *, alpha, beta, l2rg, rescale_rate,
                      batch, tiles_per_split, tile_b):
    p = pl.program_id(0)   # core split ("parallel")
    t = pl.program_id(1)   # batch tile within the split ("arbitrary")

    # Per-split accumulator lives in the resident output block.
    @pl.when(t == 0)
    def _():
        out_ref[...] = jnp.zeros_like(out_ref)

    f32 = jnp.float32
    ue = ue_ref[...].astype(f32)     # (E, TB)  user embeddings (batch on lanes)
    nue = nue_ref[...].astype(f32)   # (E, TB)  negative-user embeddings
    pi = pi_ref[...].astype(f32)     # (E, TB)  positive-item embeddings
    ni = ni_ref[...].astype(f32)     # (E, TB)  negative-item embeddings
    rate = rate_ref[...]             # (1, TB)

    e, tb = ue.shape
    ub = user_b_ref[0, 0]            # SMEM scalars
    ib = item_b_ref[0, 0]

    # Hoisted weight broadcasts (JAX does not CSE broadcast_in_dim), reused
    # for the positive and negative streams.
    uw_b = jnp.broadcast_to(user_w_ref[...].astype(f32), (e, tb))
    iw_b = jnp.broadcast_to(item_w_ref[...].astype(f32), (e, tb))

    # Linear(edim -> 1): elementwise multiply + sublane reduce -> lane-dense
    # (1, TB) logits.
    # TODO(synk): on v7x, offload these four projections to the MXU (stack the
    # four streams along sublanes into a (4E=128, TB) operand and use one
    # (4,128)@(128,TB) jnp.dot); kept on the VPU here for portability.
    pul = jnp.sum(ue * uw_b, axis=0, keepdims=True) + ub
    nul = jnp.sum(nue * uw_b, axis=0, keepdims=True) + ub
    pil = jnp.sum(pi * iw_b, axis=0, keepdims=True) + ib
    nil = jnp.sum(ni * iw_b, axis=0, keepdims=True) + ib

    score = jnp.sum(ue * pi, axis=0, keepdims=True)               # (1, TB)
    pred = jax.nn.sigmoid(pul) * jax.nn.sigmoid(pil) * score
    if rescale_rate:
        pred = 1.0 + 4.0 * jax.nn.sigmoid(pred)
    sq_err = (pred - rate) ** 2                                    # (1, TB)

    bce_user = _bce_with_logits(pul, 1.0) + _bce_with_logits(nul, 0.0)
    bce_item = _bce_with_logits(pil, 1.0) + _bce_with_logits(nil, 0.0)

    # Fused L2 regularizer: one sublane reduce instead of three.
    reg_cols = jnp.sum(ue * ue + pi * pi + ni * ni, axis=0, keepdims=True)

    # Mask padded batch columns (tail tile and any padded parallel split).
    col = ((p * tiles_per_split + t) * tile_b
           + jax.lax.broadcasted_iota(jnp.int32, (1, tile_b), 1))
    mask = (col < batch).astype(f32)

    # All loss terms share the same 1/B divisor, so accumulate one weighted
    # partial per column; the wrapper divides by B after combining splits.
    per_col = (sq_err + alpha * bce_user + beta * bce_item
               + (0.5 * l2rg) * reg_cols) * mask                   # (1, TB)

    # Lane-parallel accumulation: fold the (1, TB) row into (1, 128) with
    # vreg-aligned static slices (no cross-lane reduce on the critical path);
    # the final cross-lane reduce happens once in the wrapper.
    folded = per_col[:, 0:128]
    for j in range(1, tile_b // 128):
        folded = folded + per_col[:, j * 128:(j + 1) * 128]
    out_ref[0:1, :] = out_ref[0:1, :] + folded


def macr_rate_forward(params, user, item, rate, neg_user, neg_item, *,
                      alpha, beta, l2rg, rescale_rate,
                      emb_dtype=jnp.float32):
    """Replicates MACR_rate.forward (negatives passed in for determinism).

    emb_dtype=jnp.bfloat16 halves HBM traffic on the four embedding streams
    (f32 accumulation in-kernel) at a small numerics cost vs the f32 module.
    """
    # --- glue: embedding gathers in plain JAX (per-row DMA gather of E=32
    # rows inside the kernel would issue thousands of ~128 B DMAs). ---
    user_emb = params["user_embs"][user]       # (B, E)
    neg_user_emb = params["user_embs"][neg_user]
    pos_hi = params["item_embs"][item]
    neg_hi = params["item_embs"][neg_item]

    B, E = user_emb.shape
    nsplit, tb_max = _chip_defaults()

    # Tile sizing: batch on lanes, multiples of 128, as fat as possible (fewer
    # grid steps => per-step overhead amortized), split across nsplit cores.
    tb = min(tb_max, _round_up(pl.cdiv(B, nsplit), 128))
    tiles_per_split = pl.cdiv(B, nsplit * tb)
    b_pad = nsplit * tiles_per_split * tb

    def to_lane_major(x):
        # TODO(synk): this transpose+pad costs one extra HBM read+write pass
        # over the gathered streams; an in-kernel (TB, 32)->(32, TB) transpose
        # would remove it but that shape is not reliably lowered by Mosaic.
        xt = x.astype(emb_dtype).T                          # (E, B)
        return jnp.pad(xt, ((0, 0), (0, b_pad - B)))        # (E, b_pad)

    ue = to_lane_major(user_emb)
    nue = to_lane_major(neg_user_emb)
    pi = to_lane_major(pos_hi)
    ni = to_lane_major(neg_hi)
    rate_row = jnp.pad(rate.astype(jnp.float32)[None, :],
                       ((0, 0), (0, b_pad - B)))             # (1, b_pad)

    user_w = params["user_w"].astype(emb_dtype).T            # (E, 1)
    item_w = params["item_w"].astype(emb_dtype).T            # (E, 1)
    user_b = params["user_b"].astype(jnp.float32)            # (1, 1) -> SMEM
    item_b = params["item_b"].astype(jnp.float32)            # (1, 1) -> SMEM

    kernel = functools.partial(
        _macr_rate_kernel,
        alpha=float(alpha), beta=float(beta), l2rg=float(l2rg),
        rescale_rate=bool(rescale_rate),
        batch=int(B), tiles_per_split=int(tiles_per_split), tile_b=int(tb))

    emb_map = lambda p, t: (0, p * tiles_per_split + t)
    fixed_map = lambda p, t: (0, 0)

    grid_spec = pltpu.PrefetchScalarGridSpec(
        num_scalar_prefetch=0,
        grid=(nsplit, tiles_per_split),
        in_specs=[
            # Default double-buffering is enough once tiles are fat; bump to
            # pipeline_mode=pl.Buffered(3) only if traces show exposed DMA.
            pl.BlockSpec((E, tb), emb_map),        # user_emb
            pl.BlockSpec((E, tb), emb_map),        # neg_user_emb
            pl.BlockSpec((E, tb), emb_map),        # pos_hi
            pl.BlockSpec((E, tb), emb_map),        # neg_hi
            pl.BlockSpec((1, tb), emb_map),        # rate
            pl.BlockSpec((E, 1), fixed_map),       # user_w
            pl.BlockSpec((E, 1), fixed_map),       # item_w
            pl.BlockSpec(memory_space=pltpu.MemorySpace.SMEM),  # user_b
            pl.BlockSpec(memory_space=pltpu.MemorySpace.SMEM),  # item_b
        ],
        # One (8,128) block per parallel split; only row 0 is meaningful, the
        # rest stays zero, so a plain sum in the wrapper combines the splits.
        out_specs=pl.BlockSpec((8, 128), lambda p, t: (p, 0)),
    )

    emb_itemsize = jnp.dtype(emb_dtype).itemsize
    cost = pl.CostEstimate(
        flops=int((16 * E + 48) * b_pad),
        transcendentals=int(12 * b_pad),
        bytes_accessed=int(4 * emb_itemsize * E * b_pad      # 4 emb streams
                           + 4 * b_pad                        # rate
                           + 2 * emb_itemsize * E + 8         # weights+biases
                           + nsplit * 8 * 128 * 4),           # partials out
    )

    partials = pl.pallas_call(
        kernel,
        grid_spec=grid_spec,
        out_shape=jax.ShapeDtypeStruct((nsplit * 8, 128), jnp.float32),
        compiler_params=pltpu.CompilerParams(
            # TODO(synk): on v7x verify the leading axis really lands on both
            # TensorCores (xprof); switch to CORE_PARALLEL / pl.core_map if not.
            dimension_semantics=("parallel", "arbitrary"),
            vmem_limit_bytes=48 * 1024 * 1024),
        cost_estimate=cost,
    )(ue, nue, pi, ni, rate_row, user_w, item_w, user_b, item_b)

    return jnp.sum(partials) / B


def _reference_forward(params, user, item, rate, neg_user, neg_item, *,
                       alpha, beta, l2rg, rescale_rate):
    user_emb = params["user_embs"][user]
    neg_user_emb = params["user_embs"][neg_user]
    pos_hi = params["item_embs"][item]
    neg_hi = params["item_embs"][neg_item]

    def lin(x, w, b):
        return jnp.sum(x * w, axis=-1, keepdims=True) + b[0, 0]

    pul = lin(user_emb, params["user_w"], params["user_b"])
    nul = lin(neg_user_emb, params["user_w"], params["user_b"])
    pil = lin(pos_hi, params["item_w"], params["item_b"])
    nil = lin(neg_hi, params["item_w"], params["item_b"])

    pred = (jax.nn.sigmoid(pul) * jax.nn.sigmoid(pil)
            * jnp.sum(user_emb * pos_hi, axis=-1, keepdims=True))
    if rescale_rate:
        pred = 1.0 + 4.0 * jax.nn.sigmoid(pred)
    rate_loss = jnp.mean((pred[:, 0] - rate) ** 2)
    user_loss = (jnp.mean(_bce_with_logits(pul, 1.0))
                 + jnp.mean(_bce_with_logits(nul, 0.0)))
    item_loss = (jnp.mean(_bce_with_logits(pil, 1.0))
                 + jnp.mean(_bce_with_logits(nil, 0.0)))
    reg = (jnp.sum(user_emb ** 2) + jnp.sum(pos_hi ** 2) + jnp.sum(neg_hi ** 2)) / 2
    emb_loss = reg / user_emb.shape[0]
    return rate_loss + alpha * user_loss + beta * item_loss + l2rg * emb_loss


if __name__ == "__main__":
    # Hyper-params (stand-in for `args`)
    user_num, item_num, edim = 100, 200, 32
    alpha, beta, l2rg = 1e-3, 1e-3, 1e-4
    rescale_rate = True
    B = 8

    key = jax.random.PRNGKey(0)
    k_ue, k_ie, k_uw, k_ub, k_iw, k_ib, k_u, k_i, k_r, k_nu, k_ni = \
        jax.random.split(key, 11)

    # Deterministic parameter init (mirrors __init__ shapes).
    params = {
        "user_embs": jax.random.uniform(
            k_ue, (user_num, edim), jnp.float32,
            minval=-0.5 / user_num, maxval=0.5 / user_num),
        "item_embs": jax.random.uniform(
            k_ie, (item_num, edim), jnp.float32,
            minval=-0.5 / item_num, maxval=0.5 / item_num),
        # nn.Linear(edim, 1): weight (1, edim), bias (1,) -> stored as (1,1)
        "user_w": jax.random.uniform(k_uw, (1, edim), jnp.float32,
                                     minval=-(edim ** -0.5), maxval=edim ** -0.5),
        "user_b": jax.random.uniform(k_ub, (1, 1), jnp.float32,
                                     minval=-(edim ** -0.5), maxval=edim ** -0.5),
        "item_w": jax.random.uniform(k_iw, (1, edim), jnp.float32,
                                     minval=-(edim ** -0.5), maxval=edim ** -0.5),
        "item_b": jax.random.uniform(k_ib, (1, 1), jnp.float32,
                                     minval=-(edim ** -0.5), maxval=edim ** -0.5),
    }

    # Batch: (user, u_ir, nbr, item, rate) -- u_ir / nbr are unused in forward.
    user = jax.random.randint(k_u, (B,), 1, user_num)
    item = jax.random.randint(k_i, (B,), 1, item_num)
    rate = jax.random.uniform(k_r, (B,), jnp.float32, minval=1.0, maxval=5.0)
    # torch.randint_like negatives, generated deterministically here (glue).
    neg_user = jax.random.randint(k_nu, (B,), 1, user_num)
    neg_item = jax.random.randint(k_ni, (B,), 1, item_num)

    loss = macr_rate_forward(params, user, item, rate, neg_user, neg_item,
                             alpha=alpha, beta=beta, l2rg=l2rg,
                             rescale_rate=rescale_rate)
    loss = jax.block_until_ready(loss)

    ref = _reference_forward(params, user, item, rate, neg_user, neg_item,
                             alpha=alpha, beta=beta, l2rg=l2rg,
                             rescale_rate=rescale_rate)
    assert jnp.allclose(loss, ref, rtol=1e-4, atol=1e-5), (loss, ref)

    print("KERNEL_OK")
</pallas_src>

<mosaic_0001>
module attributes {stable_mosaic.version = 11 : i64} {
  func.func @_macr_rate_kernel(%arg0: i32, %arg1: i32, %arg2: memref<32x128xf32, #tpu.memory_space<vmem>>, %arg3: memref<32x128xf32, #tpu.memory_space<vmem>>, %arg4: memref<32x128xf32, #tpu.memory_space<vmem>>, %arg5: memref<32x128xf32, #tpu.memory_space<vmem>>, %arg6: memref<1x128xf32, #tpu.memory_space<vmem>>, %arg7: memref<32x1xf32, #tpu.memory_space<vmem>>, %arg8: memref<32x1xf32, #tpu.memory_space<vmem>>, %arg9: memref<1x1xf32, #tpu.memory_space<smem>>, %arg10: memref<1x1xf32, #tpu.memory_space<smem>>, %arg11: memref<8x128xf32, #tpu.memory_space<vmem>>) attributes {dimension_semantics = [#tpu.dimension_semantics<parallel>, #tpu.dimension_semantics<arbitrary>], iteration_bounds = array<i64: 1, 1>, scalar_prefetch = 0 : i64, scratch_operands = 0 : i64, tpu.core_type = #tpu.core_type<tc>, window_params = [{transform_indices = @transform_0, window_bounds = array<i64: 32, 128>}, {transform_indices = @transform_1, window_bounds = array<i64: 32, 128>}, {transform_indices = @transform_2, window_bounds = array<i64: 32, 128>}, {transform_indices = @transform_3, window_bounds = array<i64: 32, 128>}, {transform_indices = @transform_4, window_bounds = array<i64: 1, 128>}, {pipeline_mode = #tpu.pipeline_mode<synchronous>, transform_indices = @transform_5, window_bounds = array<i64: 32, 1>}, {pipeline_mode = #tpu.pipeline_mode<synchronous>, transform_indices = @transform_6, window_bounds = array<i64: 32, 1>}, {transform_indices = @transform_7, window_bounds = array<i64: 1, 1>}, {transform_indices = @transform_8, window_bounds = array<i64: 1, 1>}, {transform_indices = @transform_9, window_bounds = array<i64: 8, 128>}]} {
    %c0_i32 = arith.constant 0 : i32
    %0 = arith.cmpi eq, %arg1, %c0_i32 : i32
    %1 = arith.extui %0 : i1 to i32
    %c0_i32_0 = arith.constant 0 : i32
    %2 = arith.cmpi ne, %1, %c0_i32_0 : i32
    scf.if %2 {
      %cst_47 = arith.constant 0.000000e+00 : f32
      %138 = vector.broadcast %cst_47 : f32 to vector<8x128xf32>
      %c0_48 = arith.constant 0 : index
      %c0_49 = arith.constant 0 : index
      %139 = vector.load %arg11[%c0_48, %c0_49] : memref<8x128xf32, #tpu.memory_space<vmem>>, vector<8x128xf32>
      tpu.vector_store %arg11[%c0_48, %c0_49], %138 {strides = array<i32>} : memref<8x128xf32, #tpu.memory_space<vmem>>, vector<8x128xf32>,
    } else {
    }
    %c0 = arith.constant 0 : index
    %c0_1 = arith.constant 0 : index
    %3 = vector.load %arg2[%c0, %c0_1] : memref<32x128xf32, #tpu.memory_space<vmem>>, vector<32x128xf32>
    %c0_2 = arith.constant 0 : index
    %c0_3 = arith.constant 0 : index
    %4 = vector.load %arg3[%c0_2, %c0_3] : memref<32x128xf32, #tpu.memory_space<vmem>>, vector<32x128xf32>
    %c0_4 = arith.constant 0 : index
    %c0_5 = arith.constant 0 : index
    %5 = vector.load %arg4[%c0_4, %c0_5] : memref<32x128xf32, #tpu.memory_space<vmem>>, vector<32x128xf32>
    %c0_6 = arith.constant 0 : index
    %c0_7 = arith.constant 0 : index
    %6 = vector.load %arg5[%c0_6, %c0_7] : memref<32x128xf32, #tpu.memory_space<vmem>>, vector<32x128xf32>
    %c0_8 = arith.constant 0 : index
    %c0_9 = arith.constant 0 : index
    %7 = vector.load %arg6[%c0_8, %c0_9] : memref<1x128xf32, #tpu.memory_space<vmem>>, vector<1x128xf32>
    %c0_10 = arith.constant 0 : index
    %c0_11 = arith.constant 0 : index
    %8 = memref.load %arg9[%c0_10, %c0_11] : memref<1x1xf32, #tpu.memory_space<smem>>
    %c0_12 = arith.constant 0 : index
    %c0_13 = arith.constant 0 : index
    %9 = memref.load %arg10[%c0_12, %c0_13] : memref<1x1xf32, #tpu.memory_space<smem>>
    %c0_14 = arith.constant 0 : index
    %c0_15 = arith.constant 0 : index
    %10 = vector.load %arg7[%c0_14, %c0_15] : memref<32x1xf32, #tpu.memory_space<vmem>>, vector<32x1xf32>
    %11 = vector.shape_cast %10 : vector<32x1xf32> to vector<32x1xf32>
    %12 = vector.broadcast %11 : vector<32x1xf32> to vector<32x128xf32>
    %c0_16 = arith.constant 0 : index
    %c0_17 = arith.constant 0 : index
    %13 = vector.load %arg8[%c0_16, %c0_17] : memref<32x1xf32, #tpu.memory_space<vmem>>, vector<32x1xf32>
    %14 = vector.shape_cast %13 : vector<32x1xf32> to vector<32x1xf32>
    %15 = vector.broadcast %14 : vector<32x1xf32> to vector<32x128xf32>
    %16 = arith.mulf %3, %12 : vector<32x128xf32>
    %cst = arith.constant dense<0.000000e+00> : vector<128xf32>
    %17 = vector.multi_reduction <add>, %16, %cst [0] : vector<32x128xf32> to vector<128xf32>
    %18 = vector.shape_cast %17 : vector<128xf32> to vector<1x128xf32>
    %19 = vector.broadcast %8 : f32 to vector<1x128xf32>
    %20 = arith.addf %18, %19 : vector<1x128xf32>
    %21 = arith.mulf %4, %12 : vector<32x128xf32>
    %cst_18 = arith.constant dense<0.000000e+00> : vector<128xf32>
    %22 = vector.multi_reduction <add>, %21, %cst_18 [0] : vector<32x128xf32> to vector<128xf32>
    %23 = vector.shape_cast %22 : vector<128xf32> to vector<1x128xf32>
    %24 = vector.broadcast %8 : f32 to vector<1x128xf32>
    %25 = arith.addf %23, %24 : vector<1x128xf32>
    %26 = arith.mulf %5, %15 : vector<32x128xf32>
    %cst_19 = arith.constant dense<0.000000e+00> : vector<128xf32>
    %27 = vector.multi_reduction <add>, %26, %cst_19 [0] : vector<32x128xf32> to vector<128xf32>
    %28 = vector.shape_cast %27 : vector<128xf32> to vector<1x128xf32>
    %29 = vector.broadcast %9 : f32 to vector<1x128xf32>
    %30 = arith.addf %28, %29 : vector<1x128xf32>
    %31 = arith.mulf %6, %15 : vector<32x128xf32>
    %cst_20 = arith.constant dense<0.000000e+00> : vector<128xf32>
    %32 = vector.multi_reduction <add>, %31, %cst_20 [0] : vector<32x128xf32> to vector<128xf32>
    %33 = vector.shape_cast %32 : vector<128xf32> to vector<1x128xf32>
    %34 = vector.broadcast %9 : f32 to vector<1x128xf32>
    %35 = arith.addf %33, %34 : vector<1x128xf32>
    %36 = arith.mulf %3, %5 : vector<32x128xf32>
    %cst_21 = arith.constant dense<0.000000e+00> : vector<128xf32>
    %37 = vector.multi_reduction <add>, %36, %cst_21 [0] : vector<32x128xf32> to vector<128xf32>
    %38 = vector.shape_cast %37 : vector<128xf32> to vector<1x128xf32>
    %39 = arith.negf %20 : vector<1x128xf32>
    %40 = math.exp %39 : vector<1x128xf32>
    %cst_22 = arith.constant 1.000000e+00 : f32
    %41 = vector.broadcast %cst_22 : f32 to vector<1x128xf32>
    %42 = arith.addf %41, %40 : vector<1x128xf32>
    %43 = arith.divf %41, %42 : vector<1x128xf32>
    %44 = arith.negf %30 : vector<1x128xf32>
    %45 = math.exp %44 : vector<1x128xf32>
    %cst_23 = arith.constant 1.000000e+00 : f32
    %46 = vector.broadcast %cst_23 : f32 to vector<1x128xf32>
    %47 = arith.addf %46, %45 : vector<1x128xf32>
    %48 = arith.divf %46, %47 : vector<1x128xf32>
    %49 = arith.mulf %43, %48 : vector<1x128xf32>
    %50 = arith.mulf %49, %38 : vector<1x128xf32>
    %51 = arith.negf %50 : vector<1x128xf32>
    %52 = math.exp %51 : vector<1x128xf32>
    %cst_24 = arith.constant 1.000000e+00 : f32
    %53 = vector.broadcast %cst_24 : f32 to vector<1x128xf32>
    %54 = arith.addf %53, %52 : vector<1x128xf32>
    %55 = arith.divf %53, %54 : vector<1x128xf32>
    %cst_25 = arith.constant 4.000000e+00 : f32
    %56 = vector.broadcast %cst_25 : f32 to vector<1x128xf32>
    %57 = arith.mulf %56, %55 : vector<1x128xf32>
    %cst_26 = arith.constant 1.000000e+00 : f32
    %58 = vector.broadcast %cst_26 : f32 to vector<1x128xf32>
    %59 = arith.addf %58, %57 : vector<1x128xf32>
    %60 = arith.subf %59, %7 : vector<1x128xf32>
    %61 = arith.mulf %60, %60 : vector<1x128xf32>
    %cst_27 = arith.constant 0.000000e+00 : f32
    %62 = vector.broadcast %cst_27 : f32 to vector<1x128xf32>
    %63 = arith.maximumf %20, %62 : vector<1x128xf32>
    %cst_28 = arith.constant 1.000000e+00 : f32
    %64 = vector.broadcast %cst_28 : f32 to vector<1x128xf32>
    %65 = arith.mulf %20, %64 : vector<1x128xf32>
    %66 = arith.subf %63, %65 : vector<1x128xf32>
    %67 = math.absf %20 : vector<1x128xf32>
    %cst_29 = arith.constant 0.000000e+00 : f32
    %68 = vector.broadcast %cst_29 : f32 to vector<1x128xf32>
    %69 = arith.subf %68, %67 : vector<1x128xf32>
    %70 = math.exp %69 : vector<1x128xf32>
    %71 = math.log1p %70 : vector<1x128xf32>
    %72 = arith.addf %66, %71 : vector<1x128xf32>
    %cst_30 = arith.constant 0.000000e+00 : f32
    %73 = vector.broadcast %cst_30 : f32 to vector<1x128xf32>
    %74 = arith.maximumf %25, %73 : vector<1x128xf32>
    %cst_31 = arith.constant 0.000000e+00 : f32
    %75 = vector.broadcast %cst_31 : f32 to vector<1x128xf32>
    %76 = arith.mulf %25, %75 : vector<1x128xf32>
    %77 = arith.subf %74, %76 : vector<1x128xf32>
    %78 = math.absf %25 : vector<1x128xf32>
    %cst_32 = arith.constant 0.000000e+00 : f32
    %79 = vector.broadcast %cst_32 : f32 to vector<1x128xf32>
    %80 = arith.subf %79, %78 : vector<1x128xf32>
    %81 = math.exp %80 : vector<1x128xf32>
    %82 = math.log1p %81 : vector<1x128xf32>
    %83 = arith.addf %77, %82 : vector<1x128xf32>
    %84 = arith.addf %72, %83 : vector<1x128xf32>
    %cst_33 = arith.constant 0.000000e+00 : f32
    %85 = vector.broadcast %cst_33 : f32 to vector<1x128xf32>
    %86 = arith.maximumf %30, %85 : vector<1x128xf32>
    %cst_34 = arith.constant 1.000000e+00 : f32
    %87 = vector.broadcast %cst_34 : f32 to vector<1x128xf32>
    %88 = arith.mulf %30, %87 : vector<1x128xf32>
    %89 = arith.subf %86, %88 : vector<1x128xf32>
    %90 = math.absf %30 : vector<1x128xf32>
    %cst_35 = arith.constant 0.000000e+00 : f32
    %91 = vector.broadcast %cst_35 : f32 to vector<1x128xf32>
    %92 = arith.subf %91, %90 : vector<1x128xf32>
    %93 = math.exp %92 : vector<1x128xf32>
    %94 = math.log1p %93 : vector<1x128xf32>
    %95 = arith.addf %89, %94 : vector<1x128xf32>
    %cst_36 = arith.constant 0.000000e+00 : f32
    %96 = vector.broadcast %cst_36 : f32 to vector<1x128xf32>
    %97 = arith.maximumf %35, %96 : vector<1x128xf32>
    %cst_37 = arith.constant 0.000000e+00 : f32
    %98 = vector.broadcast %cst_37 : f32 to vector<1x128xf32>
    %99 = arith.mulf %35, %98 : vector<1x128xf32>
    %100 = arith.subf %97, %99 : vector<1x128xf32>
    %101 = math.absf %35 : vector<1x128xf32>
    %cst_38 = arith.constant 0.000000e+00 : f32
    %102 = vector.broadcast %cst_38 : f32 to vector<1x128xf32>
    %103 = arith.subf %102, %101 : vector<1x128xf32>
    %104 = math.exp %103 : vector<1x128xf32>
    %105 = math.log1p %104 : vector<1x128xf32>
    %106 = arith.addf %100, %105 : vector<1x128xf32>
    %107 = arith.addf %95, %106 : vector<1x128xf32>
    %108 = arith.mulf %3, %3 : vector<32x128xf32>
    %109 = arith.mulf %5, %5 : vector<32x128xf32>
    %110 = arith.addf %108, %109 : vector<32x128xf32>
    %111 = arith.mulf %6, %6 : vector<32x128xf32>
    %112 = arith.addf %110, %111 : vector<32x128xf32>
    %cst_39 = arith.constant dense<0.000000e+00> : vector<128xf32>
    %113 = vector.multi_reduction <add>, %112, %cst_39 [0] : vector<32x128xf32> to vector<128xf32>
    %114 = vector.shape_cast %113 : vector<128xf32> to vector<1x128xf32>
    %c1_i32 = arith.constant 1 : i32
    %115 = arith.muli %arg0, %c1_i32 : i32
    %116 = arith.addi %115, %arg1 : i32
    %c128_i32 = arith.constant 128 : i32
    %117 = arith.muli %116, %c128_i32 : i32
    %118 = tpu.iota {dimensions = array<i32: 1>} : vector<1x128xi32>
    %119 = vector.broadcast %117 : i32 to vector<1x128xi32>
    %120 = arith.addi %119, %118 : vector<1x128xi32>
    %c8_i32 = arith.constant 8 : i32
    %121 = vector.broadcast %c8_i32 : i32 to vector<1x128xi32>
    %122 = arith.cmpi slt, %120, %121 : vector<1x128xi32>
    %123 = arith.extui %122 : vector<1x128xi1> to vector<1x128xi32>
    %124 = arith.sitofp %123 : vector<1x128xi32> to vector<1x128xf32>
    %cst_40 = arith.constant 1.000000e-03 : f32
    %125 = vector.broadcast %cst_40 : f32 to vector<1x128xf32>
    %126 = arith.mulf %125, %84 : vector<1x128xf32>
    %127 = arith.addf %61, %126 : vector<1x128xf32>
    %cst_41 = arith.constant 1.000000e-03 : f32
    %128 = vector.broadcast %cst_41 : f32 to vector<1x128xf32>
    %129 = arith.mulf %128, %107 : vector<1x128xf32>
    %130 = arith.addf %127, %129 : vector<1x128xf32>
    %cst_42 = arith.constant 5.000000e-05 : f32
    %131 = vector.broadcast %cst_42 : f32 to vector<1x128xf32>
    %132 = arith.mulf %131, %114 : vector<1x128xf32>
    %133 = arith.addf %130, %132 : vector<1x128xf32>
    %134 = arith.mulf %133, %124 : vector<1x128xf32>
    %c0_43 = arith.constant 0 : index
    %c0_44 = arith.constant 0 : index
    %135 = vector.load %arg11[%c0_43, %c0_44] : memref<8x128xf32, #tpu.memory_space<vmem>>, vector<1x128xf32>
    %136 = arith.addf %135, %134 : vector<1x128xf32>
    %c0_45 = arith.constant 0 : index
    %c0_46 = arith.constant 0 : index
    %137 = vector.load %arg11[%c0_45, %c0_46] : memref<8x128xf32, #tpu.memory_space<vmem>>, vector<1x128xf32>
    tpu.vector_store %arg11[%c0_45, %c0_46], %136 {strides = array<i32>} : memref<8x128xf32, #tpu.memory_space<vmem>>, vector<1x128xf32>,
    return
  }
  func.func @transform_0(%arg0: i32, %arg1: i32) -> (i32, i32) {
    %c1_i32 = arith.constant 1 : i32
    %0 = arith.muli %arg0, %c1_i32 : i32
    %1 = arith.addi %0, %arg1 : i32
    %c0_i32 = arith.constant 0 : i32
    %c0_i32_0 = arith.constant 0 : i32
    return %c0_i32, %1 : i32, i32
  }
  func.func @transform_1(%arg0: i32, %arg1: i32) -> (i32, i32) {
    %c1_i32 = arith.constant 1 : i32
    %0 = arith.muli %arg0, %c1_i32 : i32
    %1 = arith.addi %0, %arg1 : i32
    %c0_i32 = arith.constant 0 : i32
    %c0_i32_0 = arith.constant 0 : i32
    return %c0_i32, %1 : i32, i32
  }
  func.func @transform_2(%arg0: i32, %arg1: i32) -> (i32, i32) {
    %c1_i32 = arith.constant 1 : i32
    %0 = arith.muli %arg0, %c1_i32 : i32
    %1 = arith.addi %0, %arg1 : i32
    %c0_i32 = arith.constant 0 : i32
    %c0_i32_0 = arith.constant 0 : i32
    return %c0_i32, %1 : i32, i32
  }
  func.func @transform_3(%arg0: i32, %arg1: i32) -> (i32, i32) {
    %c1_i32 = arith.constant 1 : i32
    %0 = arith.muli %arg0, %c1_i32 : i32
    %1 = arith.addi %0, %arg1 : i32
    %c0_i32 = arith.constant 0 : i32
    %c0_i32_0 = arith.constant 0 : i32
    return %c0_i32, %1 : i32, i32
  }
  func.func @transform_4(%arg0: i32, %arg1: i32) -> (i32, i32) {
    %c1_i32 = arith.constant 1 : i32
    %0 = arith.muli %arg0, %c1_i32 : i32
    %1 = arith.addi %0, %arg1 : i32
    %c0_i32 = arith.constant 0 : i32
    %c0_i32_0 = arith.constant 0 : i32
    return %c0_i32, %1 : i32, i32
  }
  func.func @transform_5(%arg0: i32, %arg1: i32) -> (i32, i32) {
    %c0_i32 = arith.constant 0 : i32
    %c0_i32_0 = arith.constant 0 : i32
    %c0_i32_1 = arith.constant 0 : i32
    return %c0_i32, %c0_i32_0 : i32, i32
  }
  func.func @transform_6(%arg0: i32, %arg1: i32) -> (i32, i32) {
    %c0_i32 = arith.constant 0 : i32
    %c0_i32_0 = arith.constant 0 : i32
    %c0_i32_1 = arith.constant 0 : i32
    return %c0_i32, %c0_i32_0 : i32, i32
  }
  func.func @transform_7(%arg0: i32, %arg1: i32) -> (i32, i32) {
    %c0_i32 = arith.constant 0 : i32
    %c0_i32_0 = arith.constant 0 : i32
    %c0_i32_1 = arith.constant 0 : i32
    return %c0_i32, %c0_i32_0 : i32, i32
  }
  func.func @transform_8(%arg0: i32, %arg1: i32) -> (i32, i32) {
    %c0_i32 = arith.constant 0 : i32
    %c0_i32_0 = arith.constant 0 : i32
    %c0_i32_1 = arith.constant 0 : i32
    return %c0_i32, %c0_i32_0 : i32, i32
  }
  func.func @transform_9(%arg0: i32, %arg1: i32) -> (i32, i32) {
    %c0_i32 = arith.constant 0 : i32
    %c0_i32_0 = arith.constant 0 : i32
    return %arg0, %c0_i32 : i32, i32
  }
}

</mosaic_0001>

<bundles_post_ra>
// kernel: tpu_custom_call.1
= control target key start
LH: loop header
LB: loop body
LE: loop exit
PB: predicated region body
PF: predicated region fallthrough
CT: control target
= control target key end

     0   :  { %16 = vsyncpa [#allocation5], 0  ;;  %s828_s0 = inlined_call_operand.vmem [shape: f32[32,128], index: 0, kind: input, shape index: {}]   ;;  %s829_s1 = inlined_call_operand.vmem [shape: f32[32,128], index: 1, kind: input, shape index: {}]   ;;  %s830_s2 = inlined_call_operand.hbm [shape: f32[32,128], index: 2, kind: input, shape index: {}]   ;;  %s831_s3 = inlined_call_operand.hbm [shape: f32[32,128], index: 3, kind: input, shape index: {}]   ;;  %s832_s4 = inlined_call_operand.vmem [shape: f32[1,128], index: 4, kind: input, shape index: {}]   ;;  %s833_s5 = inlined_call_operand.vmem [shape: f32[32,1], index: 5, kind: input, shape index: {}]   ;;  %s834_s6 = inlined_call_operand.vmem [shape: f32[32,1], index: 6, kind: input, shape index: {}]   ;;  %s835_s7 = inlined_call_operand.<no memory space> [shape: f32[1,1], index: 7, kind: input, shape index: {}]   ;;  %s836_s8 = inlined_call_operand.<no memory space> [shape: f32[1,1], index: 8, kind: input, shape index: {}]   ;;  %s837_s9 = inlined_call_operand.hbm [shape: f32[8,128], index: 9, kind: output, shape index: {}]  }
   0x1   :  { %17 = vsyncpa [#allocation8], 0 }
   0x2   :  { %18 = vsyncpa [#allocation6], 0  ;;  %s42_s11 = sshll.u32 %s830_s2, 4  ;;  %s598_s12 = smov [#allocation4]   ;;  %s43_s11 = int_to_ptr.hbm [resolvable:$true] %s42_s11 }
   0x3   :  { %s44_s13 = sshll.u32 %s598_s12, 4  ;;  %s58_s16 = sshll.u32 %s831_s3, 4  ;;  %s45_s13 = int_to_ptr.vmem [resolvable:$true] %s44_s13  ;;  %s59_s16 = int_to_ptr.hbm [resolvable:$true] %s58_s16 }
   0x4   :  { %s599_s17 = smov 128   ;;  %s600_s18 = smov 8  }
   0x5   :  { %50 = dma.hbm_to_vmem [thread:$0]  %s43_s11, 512, %s45_s13, [#allocation5], %s599_s17, %s599_s17, %s600_s18  }
   0x6   :  { %s601_s19 = smov [#allocation7]  }
   0x7   :  { %s60_s20 = sshll.u32 %s601_s19, 4  ;;  %s61_s20 = int_to_ptr.vmem [resolvable:$true] %s60_s20 }
   0x8   :  { %66 = dma.hbm_to_vmem [thread:$0]  %s59_s16, 512, %s61_s20, [#allocation8], %s599_s17, %s599_s17, %s600_s18  }
   0x9   :  { %592 = dma.done.wait [#allocation5], 512  }
   0xa   :  { %593 = vsyncadd [#allocation5], 4294966784 }
   0xb   :  { %594 = dma.done.wait [#allocation8], 512  }
   0xc   :  { %595 = vsyncadd [#allocation8], 4294966784  ;;  %v602_v0 = vmov 0   ;;  %v171_v1 = vld [vmem:[%s834_s6] sm:$0xff]  ;;  %v149_v3 = vld [vmem:[%s833_s5 + $0x10] sm:$0xff]  ;;  %s604_s28 = smov [#allocation9]  }
   0xd   :  { %490 = vset.pattern.permute.xlu1 %v602_v0  ;;  %489 = vset.pattern.permute.xlu0 %v602_v0  ;;  %v147_v2 = vld [vmem:[%s833_s5] sm:$0xff]  ;;  %v172_v4 = vld [vmem:[%s834_s6 + $0x8] sm:$0xff]  ;;  %v173_v6 = vld [vmem:[%s834_s6 + $0x10] sm:$0xff]  ;;  %s450_s29 = sshll.u32 %s604_s28, 4  ;;  %s452_s10 = sshll.u32 %s837_s9, 4  ;;  %s451_s29 = int_to_ptr.vmem [resolvable:$true] %s450_s29  ;;  %s453_s10 = int_to_ptr.hbm [resolvable:$true] %s452_s10 }
   0xe   :  { %491 = vset.pattern.permute.xlu2 %v602_v0  ;;  %177 = vperm.xlu1 %490, %v171_v1   ;;  %v148_v5 = vld [vmem:[%s833_s5 + $0x8] sm:$0xff]  ;;  %v174_v7 = vld [vmem:[%s834_s6 + $0x18] sm:$0xff]  ;;  %v688_v9 = vld [vmem:[%s828_s0 + $0x10] sm:$0xff] }
   0xf   :  { %153 = vperm.xlu0 %489, %v147_v2   ;;  %163 = vperm.xlu2 %491, %v149_v3   ;;  %v150_v8 = vld [vmem:[%s833_s5 + $0x18] sm:$0xff]  ;;  %v399_v10 = vmul.f32 %v688_v9, %v688_v9  ;;  %v692_v11 = vld [vmem:[#allocation4] sm:$0xff]  ;;  %v703_v15 = vld [vmem:[#allocation4 + $0x10] sm:$0xff] }
  0x10   :  { %v697_v12 = vld [vmem:[%s828_s0] sm:$0xff]  ;;  %v401_v13 = vmul.f32 %v692_v11, %v692_v11  ;;  %v403_v16 = vmul.f32 %v703_v15, %v703_v15  ;;  %v137_v21 = vld [vmem:[#allocation4 + $0x8] sm:$0xff]  ;;  %v134_v46 = vld [vmem:[%s829_s1 + $0x10] sm:$0xff] }
  0x11   :  { %v397_v14 = vmul.f32 %v697_v12, %v697_v12  ;;  %v140_v19 = vld [vmem:[#allocation7] sm:$0xff]  ;;  %v141_v22 = vld [vmem:[#allocation7 + $0x8] sm:$0xff]  ;;  %v402_v23 = vmul.f32 %v137_v21, %v137_v21  ;;  %v725_v48 = vld [vmem:[#allocation7 + $0x10] sm:$0xff] }
  0x12   :  { %v707_v18 = vadd.f32 %v403_v16, %v399_v10  ;;  %v409_v20 = vmul.f32 %v140_v19, %v140_v19  ;;  %v129_v24 = vld [vmem:[%s828_s0 + $0x8] sm:$0xff]  ;;  %v410_v25 = vmul.f32 %v141_v22, %v141_v22  ;;  %v132_v35 = vld [vmem:[%s829_s1] sm:$0xff]  ;;  %v727_v53 = vld [vmem:[#allocation4 + $0x18] sm:$0xff] }
  0x13   :  { %v405_v17 = vadd.f32 %v401_v13, %v397_v14  ;;  %v398_v26 = vmul.f32 %v129_v24, %v129_v24  ;;  %v133_v34 = vld [vmem:[%s829_s1 + $0x8] sm:$0xff]  ;;  %v732_v58 = vld [vmem:[#allocation7 + $0x18] sm:$0xff]  ;;  %v253_v14 = vmul.f32 %v692_v11, %v697_v12  ;;  %v254_v16 = vmul.f32 %v137_v21, %v129_v24 }
  0x14   :  { %v737_v59 = vld [vmem:[%s828_s0 + $0x18] sm:$0xff] }
  0x15   :  { %v413_v27 = vadd.f32 %v409_v20, %v405_v17  ;;  %v406_v28 = vadd.f32 %v402_v23, %v398_v26  ;;  %v135_v60 = vld [vmem:[%s829_s1 + $0x18] sm:$0xff]  ;;  %v255_v26 = vmul.f32 %v703_v15, %v688_v9 }
  0x16   :  { %182 = vperm.xlu1 %490, %v172_v4  }
  0x17   :  { %158 = vperm.xlu0 %489, %v148_v5   ;;  %187 = vperm.xlu2 %491, %v173_v6   ;;  %v414_v29 = vadd.f32 %v410_v25, %v406_v28 }
  0x19   :  { %v712_v30 = vadd.f32 %v414_v29, %v413_v27  ;;  %v257_v27 = vadd.f32 %v254_v16, %v253_v14  ;;  %v400_v16 = vmul.f32 %v737_v59, %v737_v59 }
  0x1e   :  { %192 = vperm.xlu1 %490, %v174_v7  }
  0x1f   :  { %168 = vperm.xlu0 %489, %v150_v8  }
  0x69   :  { %v164_v33 = vpop.permute.xlu2 %163 }
  0x6a   :  { %v197_v54 = vmul.f32 %v164_v33, %v688_v9  ;;  %v212_v55 = vmul.f32 %v164_v33, %v134_v46  ;;  %v208_v9 = vstv %s835_s7 }
  0x71   :  { %v188_v47 = vpop.permute.xlu2 %187 }
  0x72   :  { %v226_v56 = vmul.f32 %v188_v47, %v703_v15  ;;  %v241_v57 = vmul.f32 %v188_v47, %v725_v48 }
  0x80   :  { %v178_v31 = vpop.permute.xlu1 %177 }
  0x81   :  { %v154_v32 = vpop.permute.xlu0 %153  ;;  %v224_v42 = vmul.f32 %v178_v31, %v692_v11  ;;  %v239_v43 = vmul.f32 %v178_v31, %v140_v19  ;;  %v256_v11 = vmul.f32 %v727_v53, %v737_v59 }
  0x82   :  { %v195_v44 = vmul.f32 %v154_v32, %v697_v12  ;;  %v210_v45 = vmul.f32 %v154_v32, %v132_v35  ;;  %v258_v12 = vadd.f32 %v257_v27, %v255_v26 }
  0x88   :  { %v183_v36 = vpop.permute.xlu1 %182 }
  0x89   :  { %v159_v37 = vpop.permute.xlu0 %158  ;;  %v225_v38 = vmul.f32 %v183_v36, %v137_v21  ;;  %v240_v39 = vmul.f32 %v183_v36, %v141_v22  ;;  %v237_v21 = vstv %s836_s8 }
  0x8a   :  { %v196_v40 = vmul.f32 %v159_v37, %v129_v24  ;;  %v211_v41 = vmul.f32 %v159_v37, %v133_v34 }
  0x8b   :  { %v228_v49 = vadd.f32 %v225_v38, %v224_v42  ;;  %v243_v50 = vadd.f32 %v240_v39, %v239_v43 }
  0x8c   :  { %v199_v51 = vadd.f32 %v196_v40, %v195_v44  ;;  %v214_v52 = vadd.f32 %v211_v41, %v210_v45  ;;  %v259_v41 = vadd.f32 %v258_v12, %v256_v11 }
  0x8d   :  { %v229_v62 = vadd.f32 %v228_v49, %v226_v56  ;;  %v244_v63 = vadd.f32 %v243_v50, %v241_v57 }
  0x8e   :  { %v200_v1 = vadd.f32 %v199_v51, %v197_v54  ;;  %v215_v2 = vadd.f32 %v214_v52, %v212_v55  ;;  %v260_v46 = vrot.slane %v259_v41, 4 }
  0x90   :  { %v193_v61 = vpop.permute.xlu1 %192  ;;  %v261_v50 = vadd.f32 %v260_v46, %v259_v41 }
  0x91   :  { %v169_v0 = vpop.permute.xlu0 %168  ;;  %v227_v3 = vmul.f32 %v193_v61, %v727_v53  ;;  %v242_v4 = vmul.f32 %v193_v61, %v732_v58  ;;  %v411_v61 = vmul.f32 %v725_v48, %v725_v48  ;;  %v404_v48 = vmul.f32 %v727_v53, %v727_v53 }
  0x92   :  { %v198_v5 = vmul.f32 %v169_v0, %v737_v59  ;;  %v213_v6 = vmul.f32 %v169_v0, %v135_v60  ;;  %v262_v57 = vrot.slane %v261_v50, 2 }
  0x93   :  { %v230_v7 = vadd.f32 %v229_v62, %v227_v3  ;;  %v245_v8 = vadd.f32 %v244_v63, %v242_v4  ;;  %v408_v53 = vadd.f32 %v404_v48, %v400_v16 }
  0x94   :  { %v201_v10 = vadd.f32 %v200_v1, %v198_v5  ;;  %v216_v13 = vadd.f32 %v215_v2, %v213_v6  ;;  %v263_v0 = vadd.f32 %v262_v57, %v261_v50  ;;  %v415_v1 = vadd.f32 %v411_v61, %v707_v18 }
  0x95   :  { %v231_v17 = vrot.slane %v230_v7, 4  ;;  %v246_v22 = vrot.slane %v245_v8, 4 }
  0x96   :  { %v202_v19 = vrot.slane %v201_v10, 4  ;;  %v217_v25 = vrot.slane %v216_v13, 4 }
  0x97   :  { %v232_v20 = vadd.f32 %v231_v17, %v230_v7  ;;  %v247_v32 = vadd.f32 %v246_v22, %v245_v8  ;;  %v412_v8 = vmul.f32 %v732_v58, %v732_v58  ;;  %v418_v17 = vadd.f32 %v712_v30, %v415_v1 }
  0x98   :  { %v203_v23 = vadd.f32 %v202_v19, %v201_v10  ;;  %v218_v34 = vadd.f32 %v217_v25, %v216_v13  ;;  %v264_v10 = vrot.slane %v263_v0, 1 }
  0x99   :  { %v233_v28 = vrot.slane %v232_v20, 2  ;;  %v248_v24 = vrot.slane %v247_v32, 2  ;;  %v416_v59 = vadd.f32 %v412_v8, %v408_v53 }
  0x9a   :  { %v204_v29 = vrot.slane %v203_v23, 2  ;;  %v219_v38 = vrot.slane %v218_v34, 2 }
  0x9b   :  { %v234_v31 = vadd.f32 %v233_v28, %v232_v20  ;;  %v249_v42 = vadd.f32 %v248_v24, %v247_v32  ;;  %v419_v11 = vadd.f32 %v418_v17, %v416_v59 }
  0x9c   :  { %v205_v33 = vadd.f32 %v204_v29, %v203_v23  ;;  %v220_v44 = vadd.f32 %v219_v38, %v218_v34  ;;  %v603_v29 = vmov 0.0  }
  0x9d   :  { %v235_v35 = vrot.slane %v234_v31, 1  ;;  %v250_v47 = vrot.slane %v249_v42, 1  ;;  %127 = vst [vmem:[#allocation9] sm:$0xff] %v603_v29  ;;  %v420_v57 = vrot.slane %v419_v11, 4 }
  0x9e   :  { %v206_v36 = vrot.slane %v205_v33, 1  ;;  %v221_v49 = vrot.slane %v220_v44, 1 }
  0x9f   :  { %v236_v15 = vadd.f32 %v235_v35, %v234_v31  ;;  %v251_v52 = vadd.f32 %v250_v47, %v249_v42 }
  0xa0   :  { %v207_v37 = vadd.f32 %v206_v36, %v205_v33  ;;  %v222_v54 = vadd.f32 %v221_v49, %v220_v44 }
  0xa1   :  { %v757_v39 = vadd.f32 %v237_v21, %v236_v15  ;;  %v765_v62 = vadd.f32 %v251_v52, %v237_v21  ;;  %v265_v15 = vadd.f32 %v264_v10, %v263_v0 }
  0xa2   :  { %v759_v40 = vadd.f32 %v208_v9, %v207_v37  ;;  %v767_v63 = vadd.f32 %v222_v54, %v208_v9 }
  0xa3   :  { %v479_v43 = vmul.f32 -1.442695, %v757_v39  ;;  %v365_v2 = vand.u32 2147483647, %v757_v39  ;;  %v382_v3 = vand.u32 2147483647, %v765_v62 }
  0xa4   :  { %v478_v45 = vmul.f32 -1.442695, %v759_v40  ;;  %v331_v4 = vand.u32 2147483647, %v759_v40  ;;  %v348_v5 = vand.u32 2147483647, %v767_v63 }
  0xa5   :  { %492 = vpow2.f32 %v479_v43  ;;  %v366_v14 = vsub.f32 0.0, %v365_v2  ;;  %v383_v19 = vsub.f32 0.0, %v382_v3  ;;  %v329_v61 = vmax.f32 %v759_v40, 0.0 }
  0xa6   :  { %494 = vpow2.f32 %v478_v45  ;;  %v332_v22 = vsub.f32 0.0, %v331_v4  ;;  %v349_v23 = vsub.f32 0.0, %v348_v5  ;;  %v345_v48 = vmax.f32 %v767_v63, 0.0 }
  0xa7   :  { %v367_v33 = vmul.f32 1.442695, %v366_v14  ;;  %v384_v38 = vmul.f32 1.442695, %v383_v19  ;;  %v380_v14 = vmul.f32 0.0, %v765_v62  ;;  %v330_v19 = vsub.f32 %v329_v61, %v759_v40 }
  0xa8   :  { %v333_v34 = vmul.f32 1.442695, %v332_v22  ;;  %v350_v9 = vmul.f32 1.442695, %v349_v23 }
  0xab   :  { %v493_v51 = vpop.eup %492 }
  0xac   :  { %v495_v55 = vpop.eup %494  ;;  %v288_v56 = vadd.f32 1.0, %v493_v51 }
  0xad   :  { %v269_v60 = vadd.f32 1.0, %v495_v55 }
  0xae   :  { %496 = vrcp.f32 %v288_v56  ;;  %v300_v26 = vand.u32 2147483648, %v288_v56  ;;  %v298_v58 = vand.u32 2147483647, %v288_v56  ;;  %vm294_vm2 = vweird.f32 %v288_v56 }
  0xaf   :  { %498 = vrcp.f32 %v269_v60  ;;  %v281_v27 = vand.u32 2147483648, %v269_v60  ;;  %v279_v32 = vand.u32 2147483647, %v269_v60  ;;  %vm275_vm3 = vweird.f32 %v269_v60 }
  0xb0   :  { %v301_v36 = vor.u32 1.1754944e-38, %v300_v26  ;;  %vm299_vm6 = vcmp.eq.f32.partialorder %v298_v58, 8.507059e+37  ;;  %500 = vpow2.f32 %v367_v33 }
  0xb1   :  { %v282_v12 = vor.u32 1.1754944e-38, %v281_v27  ;;  %vm280_vm7 = vcmp.eq.f32.partialorder %v279_v32, 8.507059e+37  ;;  %502 = vpow2.f32 %v333_v34 }
  0xb2   :  { %504 = vpow2.f32 %v350_v9 }
  0xb3   :  { %506 = vpow2.f32 %v384_v38 }
  0xb4   :  { %v497_v6 = vpop.eup %496 }
  0xb5   :  { %v499_v7 = vpop.eup %498  ;;  %v290_v13 = vmul.f32 %v497_v6, %v288_v56  ;;  %vm295_vm0 = vweird.f32 %v497_v6 }
  0xb6   :  { %v271_v18 = vmul.f32 %v499_v7, %v269_v60  ;;  %vm276_vm1 = vweird.f32 %v499_v7  ;;  %vm296_vm4 = vmor %vm294_vm2, %vm295_vm0  ;;  %v501_v45 = vpop.eup %500 }
  0xb7   :  { %v291_v20 = vsub.f32 1.0, %v290_v13  ;;  %vm277_vm5 = vmor %vm275_vm3, %vm276_vm1  ;;  %v503_v46 = vpop.eup %502  ;;  %v369_v49 = vadd.f32 1.0, %v501_v45  ;;  %v372_v60 = vmul.f32 -0.5, %v501_v45  ;;  %v375_v2 = vand.u32 2147483647, %v501_v45 }
  0xb8   :  { %v272_v25 = vsub.f32 1.0, %v271_v18  ;;  %v505_v47 = vpop.eup %504  ;;  %v335_v51 = vadd.f32 1.0, %v503_v46  ;;  %v338_v1 = vmul.f32 -0.5, %v503_v46  ;;  %v341_v4 = vand.u32 2147483647, %v503_v46 }
  0xb9   :  { %v292_v28 = vmul.f32 %v497_v6, %v291_v20  ;;  %v507_v50 = vpop.eup %506  ;;  %v352_v52 = vadd.f32 1.0, %v505_v47  ;;  %v355_v0 = vmul.f32 -0.5, %v505_v47  ;;  %v379_v13 = vmax.f32 %v765_v62, 0.0 }
  0xba   :  { %v273_v31 = vmul.f32 %v499_v7, %v272_v25  ;;  %v386_v55 = vadd.f32 1.0, %v507_v50  ;;  %v389_v8 = vmul.f32 -0.5, %v507_v50  ;;  %v421_v18 = vadd.f32 %v420_v57, %v419_v11 }
  0xbb   :  { %v293_v30 = vadd.f32 %v497_v6, %v292_v28  ;;  %v373_v16 = vadd.f32 1.0, %v372_v60  ;;  %v356_v20 = vadd.f32 1.0, %v355_v0  ;;  %v339_v22 = vadd.f32 1.0, %v338_v1 }
  0xbc   :  { %v274_v35 = vadd.f32 %v499_v7, %v273_v31  ;;  %vm792_vm8 = vcmp.lt.f32.partialorder %v375_v2, 0.0004427343  ;;  %v358_v26 = vand.u32 2147483647, %v505_v47  ;;  %vm797_vm9 = vcmp.lt.f32.partialorder %v341_v4, 0.0004427343 }
  0xbd   :  { %v297_v21 = vsel %vm296_vm4, %v497_v6, %v293_v30  ;;  %v363_v6 = vmax.f32 %v757_v39, 0.0  ;;  %v392_v62 = vand.u32 2147483647, %v507_v50  ;;  %v390_v31 = vadd.f32 1.0, %v389_v8 }
  0xbe   :  { %v278_v24 = vsel %vm277_vm5, %v499_v7, %v274_v35  ;;  %v302_v37 = vsel %vm299_vm6, %v301_v36, %v297_v21  ;;  %v346_v7 = vmul.f32 0.0, %v767_v63  ;;  %v422_v40 = vrot.slane %v421_v18, 2 }
  0xbf   :  { %v283_v41 = vsel %vm280_vm7, %v282_v12, %v278_v24  ;;  %v374_v33 = vmul.f32 %v501_v45, %v373_v16  ;;  %v357_v30 = vmul.f32 %v505_v47, %v356_v20  ;;  %v340_v35 = vmul.f32 %v503_v46, %v339_v22 }
  0xc0   :  { %v304_v42 = vmul.f32 %v302_v37, %v283_v41  ;;  %v347_v27 = vsub.f32 %v345_v48, %v346_v7  ;;  %vm802_vm10 = vcmp.lt.f32.partialorder %v358_v26, 0.0004427343  ;;  %v391_v24 = vmul.f32 %v507_v50, %v390_v31 }
  0xc1   :  { %vm811_vm12 = vcmp.lt.f32.partialorder %v392_v62, 0.0004427343  ;;  %v423_v38 = vadd.f32 %v422_v40, %v421_v18  ;;  %v428_v57 = vlaneseq }
  0xc2   :  { %v305_v43 = vmul.f32 %v304_v42, %v265_v15 }
  0xc4   :  { %v480_v44 = vmul.f32 -1.442695, %v305_v43  ;;  %v364_v43 = vsub.f32 %v363_v6, %v757_v39  ;;  %v144_v39 = vld [vmem:[%s832_s4] sm:$0x1] }
  0xc6   :  { %508 = vpow2.f32 %v480_v44  ;;  %v381_v44 = vsub.f32 %v379_v13, %v380_v14  ;;  %v442_v14 = vld [vmem:[#allocation9] sm:$0x1] }
  0xc7   :  { %510 = vlog2.f32 %v369_v49 }
  0xc8   :  { %512 = vlog2.f32 %v335_v51 }
  0xc9   :  { %514 = vlog2.f32 %v352_v52 }
  0xcc   :  { %v509_v54 = vpop.eup %508 }
  0xcd   :  { %v782_v56 = vadd.f32 1.0, %v509_v54  ;;  %v511_v3 = vpop.eup %510 }
  0xce   :  { %v513_v5 = vpop.eup %512  ;;  %v371_v59 = vmul.f32 0.6931472, %v511_v3  ;;  %v429_v3 = vand.u32 127, %v428_v57 }
  0xcf   :  { %516 = vrcp.f32 %v782_v56  ;;  %v515_v10 = vpop.eup %514  ;;  %v337_v58 = vmul.f32 0.6931472, %v513_v5  ;;  %v321_v34 = vand.u32 2147483648, %v782_v56  ;;  %v319_v21 = vand.u32 2147483647, %v782_v56 }
  0xd0   :  { %518 = vlog2.f32 %v386_v55  ;;  %v354_v28 = vmul.f32 0.6931472, %v515_v10  ;;  %vm315_vm13 = vweird.f32 %v782_v56  ;;  %v377_v42 = vsel %vm792_vm8, %v374_v33, %v371_v59 }
  0xd1   :  { %v343_v15 = vsel %vm797_vm9, %v340_v35, %v337_v58  ;;  %v322_v45 = vor.u32 1.1754944e-38, %v321_v34  ;;  %vm320_vm15 = vcmp.eq.f32.partialorder %v319_v21, 8.507059e+37  ;;  %v378_v52 = vadd.f32 %v377_v42, %v364_v43 }
  0xd2   :  { %v360_v9 = vsel %vm802_vm10, %v357_v30, %v354_v28  ;;  %v344_v50 = vadd.f32 %v343_v15, %v330_v19  ;;  %vm432_vm0 = vcmp.lt.s32.totalorder %v429_v3, 8 }
  0xd3   :  { %v361_v47 = vadd.f32 %v360_v9, %v347_v27  ;;  %v481_v10 = vsel %vm432_vm0, 1.0, %v603_v29 }
  0xd5   :  { %v517_v17 = vpop.eup %516  ;;  %v362_v61 = vadd.f32 %v361_v47, %v344_v50 }
  0xd6   :  { %v519_v25 = vpop.eup %518  ;;  %v311_v63 = vmul.f32 %v517_v17, %v782_v56  ;;  %vm316_vm11 = vweird.f32 %v517_v17  ;;  %v424_v56 = vrot.slane %v423_v38, 1 }
  0xd7   :  { %v388_v36 = vmul.f32 0.6931472, %v519_v25  ;;  %vm317_vm14 = vmor %vm315_vm13, %vm316_vm11  ;;  %v435_v5 = vmul.f32 0.001, %v362_v61 }
  0xd8   :  { %v312_v32 = vsub.f32 1.0, %v311_v63  ;;  %v425_v2 = vadd.f32 %v424_v56, %v423_v38 }
  0xd9   :  { %v394_v46 = vsel %vm811_vm12, %v391_v24, %v388_v36 }
  0xda   :  { %v313_v12 = vmul.f32 %v517_v17, %v312_v32  ;;  %v395_v55 = vadd.f32 %v394_v46, %v381_v44  ;;  %v439_v7 = vmul.f32 5e-05, %v425_v2 }
  0xdc   :  { %v314_v41 = vadd.f32 %v517_v17, %v313_v12  ;;  %v396_v1 = vadd.f32 %v395_v55, %v378_v52 }
  0xde   :  { %v318_v49 = vsel %vm317_vm14, %v517_v17, %v314_v41  ;;  %v437_v48 = vmul.f32 0.001, %v396_v1 }
  0xdf   :  { %v323_v51 = vsel %vm320_vm15, %v322_v45, %v318_v49 }
  0xe0   :  { %v325_v54 = vmul.f32 4.0, %v323_v51 }
  0xe2   :  { %v326_v60 = vadd.f32 1.0, %v325_v54 }
  0xe4   :  { %v327_v0 = vsub.f32 %v326_v60, %v144_v39 }
  0xe6   :  { %v328_v4 = vmul.f32 %v327_v0, %v327_v0 }
  0xe8   :  { %v436_v6 = vadd.f32 %v435_v5, %v328_v4 }
  0xea   :  { %v438_v8 = vadd.f32 %v437_v48, %v436_v6 }
  0xec   :  { %v440_v13 = vadd.f32 %v439_v7, %v438_v8 }
  0xee   :  { %v441_v18 = vmul.f32 %v481_v10, %v440_v13 }
  0xf0   :  { %v443_v16 = vadd.f32 %v442_v14, %v441_v18 }
  0xf2   :  { %444 = vst [vmem:[#allocation9] sm:$0x1] %v443_v16 }
  0xf3   :  { %455 = dma.vmem_to_hbm [thread:$0]  %s451_s29, 128, %s453_s10, [#allocation6]  }
  0xf4   :  { %596 = dma.done.wait [#allocation6], 128  }
  0xf5   :  { %597 = vsyncadd [#allocation6], 4294967168 }
  0xf6   :  { %460 = vsyncpa [#allocation5], 1 }
  0xf7   :  { %461 = vsyncpa [#allocation8], 1 }
  0xf8   :  { %462 = vsyncpa [#allocation6], 1 }

</bundles_post_ra>
